<compile_context>
chip_gen: v6e
topology: v6e:2x2x1
jax: 0.10.0
libtpu: 0.0.40
codegen_flags: <defaults>
</compile_context>

<pallas_src>
import math

import numpy as np
import jax
import jax.numpy as jnp
from jax.experimental import pallas as pl
from jax.experimental.pallas import tpu as pltpu


def _round_up(x, m):
    return ((x + m - 1) // m) * m


def _make_kernel(S, H, R):
    def kernel(oh_i_ref, oh_j_ref, hid_ref, w1_ref, w2_ref, b_ref,
               out_ref, l_sc, r_sc):
        # Once per batch element (first pair-tile): project the S token rows
        # through the two halves of the 2H->H Linear and lay the (S, H)
        # results out block-diagonally (R copies) so the pair gather below is
        # a single lane-dense MXU matmul producing R packed rows per slab row.
        @pl.when(pl.program_id(1) == 0)
        def _():
            h_b = hid_ref[...]                                     # (S, H)
            proj_l = jnp.dot(h_b, w1_ref[...],
                             preferred_element_type=jnp.float32)   # (S, H)
            proj_r = jnp.dot(h_b, w2_ref[...],
                             preferred_element_type=jnp.float32) + b_ref[...]
            l_sc[...] = jnp.zeros_like(l_sc)
            r_sc[...] = jnp.zeros_like(r_sc)
            for k in range(R):                                     # static, small
                l_sc[k * S:(k + 1) * S, k * H:(k + 1) * H] = proj_l
                r_sc[k * S:(k + 1) * S, k * H:(k + 1) * H] = proj_r

        # Pair gather = exact one-hot selection on the MXU; then VPU add,
        # EUP tanh, unmasked full-lane store.
        left = jnp.dot(oh_i_ref[...], l_sc[...],
                       preferred_element_type=jnp.float32)         # (tm/R, R*H)
        right = jnp.dot(oh_j_ref[...], r_sc[...],
                        preferred_element_type=jnp.float32)
        out_ref[...] = jnp.tanh(left + right).astype(out_ref.dtype)

    return kernel


def concat_handshaking(hidden, weight, bias, *, tile_m=1024):
    """hidden: (B, S, H); weight: (H, 2H) (nn.Linear layout); bias: (H,)."""
    B, S, H = hidden.shape
    P = S * (S + 1) // 2

    # Lane-dense packing factor: R consecutive pair rows share one output slab
    # row of R*H = lcm(H, 128) lanes -> unmasked vector stores.
    R = 1 if H % 128 == 0 else 128 // math.gcd(H, 128)
    row_align = 8 * R
    tm = min(_round_up(tile_m, row_align), _round_up(P, row_align))
    P_pad = _round_up(P, tm)
    T = P_pad // tm

    # Host-side pair tables -> packed one-hot selectors (P_pad/R, R*S).
    pairs_i = np.zeros(P_pad, np.int32)
    pairs_j = np.zeros(P_pad, np.int32)
    p = 0
    for i in range(S):
        for j in range(i, S):
            pairs_i[p] = i
            pairs_j[p] = j
            p += 1
    oh_i = np.zeros((P_pad // R, R * S), np.float32)
    oh_j = np.zeros((P_pad // R, R * S), np.float32)
    for q in range(P):                       # padded rows stay all-zero
        r, k = divmod(q, R)
        oh_i[r, k * S + pairs_i[q]] = 1.0
        oh_j[r, k * S + pairs_j[q]] = 1.0
    oh_i = jnp.asarray(oh_i)
    oh_j = jnp.asarray(oh_j)

    # Split the 2H->H Linear: y = [l, r] @ W^T + b = l @ W[:, :H]^T + r @ W[:, H:]^T + b
    w1 = jnp.transpose(weight[:, :H])        # (H, H) acts on repeated row i
    w2 = jnp.transpose(weight[:, H:])        # (H, H) acts on visible row j
    b2 = bias.reshape(1, H)

    kernel = _make_kernel(S, H, R)
    out_packed = pl.pallas_call(
        kernel,
        out_shape=jax.ShapeDtypeStruct((B, P_pad // R, R * H), hidden.dtype),
        grid_spec=pltpu.PrefetchScalarGridSpec(
            num_scalar_prefetch=0,
            grid=(B, T),
            in_specs=[
                pl.BlockSpec((tm // R, R * S), lambda b, t: (t, 0)),   # one-hot i
                pl.BlockSpec((tm // R, R * S), lambda b, t: (t, 0)),   # one-hot j
                pl.BlockSpec((None, S, H), lambda b, t: (b, 0, 0)),    # hidden[b]
                pl.BlockSpec((H, H), lambda b, t: (0, 0)),             # W1
                pl.BlockSpec((H, H), lambda b, t: (0, 0)),             # W2
                pl.BlockSpec((1, H), lambda b, t: (0, 0)),             # bias
            ],
            out_specs=pl.BlockSpec((None, tm // R, R * H),
                                   lambda b, t: (b, t, 0)),
            scratch_shapes=[
                pltpu.VMEM((R * S, R * H), jnp.float32),               # L (block-diag)
                pltpu.VMEM((R * S, R * H), jnp.float32),               # R (block-diag)
            ],
        ),
        compiler_params=pltpu.CompilerParams(
            dimension_semantics=("parallel", "arbitrary"),
            vmem_limit_bytes=48 * 1024 * 1024,
        ),
    )(oh_i, oh_j, hidden, w1, w2, b2)

    # Unpack the lane-dense slab back to (B, P, H): pure row-major reshape.
    return out_packed.reshape(B, P_pad, H)[:, :P, :]


def _reference(hidden, weight, bias):
    B, S, H = hidden.shape
    chunks = []
    for i in range(S):
        rep = jnp.broadcast_to(hidden[:, i:i + 1, :], (B, S - i, H))
        vis = hidden[:, i:, :]
        cat = jnp.concatenate([rep, vis], axis=-1)
        chunks.append(jnp.tanh(cat @ weight.T + bias))
    return jnp.concatenate(chunks, axis=1)


if __name__ == "__main__":
    B, S, H = 2, 8, 32
    key = jax.random.PRNGKey(0)
    k_h, k_w, k_b = jax.random.split(key, 3)

    hidden = jax.random.normal(k_h, (B, S, H), dtype=jnp.float32)
    # Deterministic nn.Linear-style init: U(-1/sqrt(2H), 1/sqrt(2H)).
    bound = 1.0 / jnp.sqrt(2.0 * H)
    weight = jax.random.uniform(k_w, (H, 2 * H), jnp.float32, -bound, bound)
    bias = jax.random.uniform(k_b, (H,), jnp.float32, -bound, bound)

    out = concat_handshaking(hidden, weight, bias)
    out = jax.block_until_ready(out)

    ref = _reference(hidden, weight, bias)
    assert out.shape == (B, S * (S + 1) // 2, H)
    assert jnp.allclose(out, ref, atol=1e-5, rtol=1e-5)
    print("KERNEL_OK")
</pallas_src>

<mosaic_0001>
module attributes {stable_mosaic.version = 11 : i64} {
  func.func @kernel(%arg0: i32, %arg1: i32, %arg2: memref<16x32xf32, #tpu.memory_space<vmem>>, %arg3: memref<16x32xf32, #tpu.memory_space<vmem>>, %arg4: memref<1x8x32xf32, #tpu.memory_space<vmem>>, %arg5: memref<32x32xf32, #tpu.memory_space<vmem>>, %arg6: memref<32x32xf32, #tpu.memory_space<vmem>>, %arg7: memref<1x32xf32, #tpu.memory_space<vmem>>, %arg8: memref<1x16x128xf32, #tpu.memory_space<vmem>>, %arg9: memref<32x128xf32, #tpu.memory_space<vmem>>, %arg10: memref<32x128xf32, #tpu.memory_space<vmem>>) attributes {dimension_semantics = [#tpu.dimension_semantics<parallel>, #tpu.dimension_semantics<arbitrary>], iteration_bounds = array<i64: 2, 1>, scalar_prefetch = 0 : i64, scratch_operands = 2 : i64, tpu.core_type = #tpu.core_type<tc>, window_params = [{transform_indices = @transform_0, window_bounds = array<i64: 16, 32>}, {transform_indices = @transform_1, window_bounds = array<i64: 16, 32>}, {transform_indices = @transform_2, window_bounds = array<i64: 1, 8, 32>}, {pipeline_mode = #tpu.pipeline_mode<synchronous>, transform_indices = @transform_3, window_bounds = array<i64: 32, 32>}, {pipeline_mode = #tpu.pipeline_mode<synchronous>, transform_indices = @transform_4, window_bounds = array<i64: 32, 32>}, {pipeline_mode = #tpu.pipeline_mode<synchronous>, transform_indices = @transform_5, window_bounds = array<i64: 1, 32>}, {transform_indices = @transform_6, window_bounds = array<i64: 1, 16, 128>}]} {
    %c0_i32 = arith.constant 0 : i32
    %0 = arith.cmpi eq, %arg1, %c0_i32 : i32
    %1 = arith.extui %0 : i1 to i32
    %c0_i32_0 = arith.constant 0 : i32
    %2 = arith.cmpi ne, %1, %c0_i32_0 : i32
    scf.if %2 {
      %c0_12 = arith.constant 0 : index
      %c0_13 = arith.constant 0 : index
      %c0_14 = arith.constant 0 : index
      %14 = vector.load %arg4[%c0_12, %c0_13, %c0_14] : memref<1x8x32xf32, #tpu.memory_space<vmem>>, vector<1x8x32xf32>
      %15 = vector.shape_cast %14 : vector<1x8x32xf32> to vector<8x32xf32>
      %c0_15 = arith.constant 0 : index
      %c0_16 = arith.constant 0 : index
      %16 = vector.load %arg5[%c0_15, %c0_16] : memref<32x32xf32, #tpu.memory_space<vmem>>, vector<32x32xf32>
      %cst_17 = arith.constant dense<0.000000e+00> : vector<8x32xf32>
      %17 = tpu.matmul %15, %16, %cst_17 {dimension_numbers = #tpu.dot_dimension_numbers<[1], [0], [0], [1], [0, 0, 1, 1], [], []>} : vector<8x32xf32>, vector<32x32xf32>, vector<8x32xf32> -> vector<8x32xf32>
      %c0_18 = arith.constant 0 : index
      %c0_19 = arith.constant 0 : index
      %18 = vector.load %arg6[%c0_18, %c0_19] : memref<32x32xf32, #tpu.memory_space<vmem>>, vector<32x32xf32>
      %cst_20 = arith.constant dense<0.000000e+00> : vector<8x32xf32>
      %19 = tpu.matmul %15, %18, %cst_20 {dimension_numbers = #tpu.dot_dimension_numbers<[1], [0], [0], [1], [0, 0, 1, 1], [], []>} : vector<8x32xf32>, vector<32x32xf32>, vector<8x32xf32> -> vector<8x32xf32>
      %c0_21 = arith.constant 0 : index
      %c0_22 = arith.constant 0 : index
      %20 = vector.load %arg7[%c0_21, %c0_22] : memref<1x32xf32, #tpu.memory_space<vmem>>, vector<1x32xf32>
      %21 = vector.broadcast %20 : vector<1x32xf32> to vector<8x32xf32>
      %22 = arith.addf %19, %21 : vector<8x32xf32>
      %cst_23 = arith.constant 0.000000e+00 : f32
      %23 = vector.broadcast %cst_23 : f32 to vector<32x128xf32>
      %c0_24 = arith.constant 0 : index
      %c0_25 = arith.constant 0 : index
      %24 = vector.load %arg9[%c0_24, %c0_25] : memref<32x128xf32, #tpu.memory_space<vmem>>, vector<32x128xf32>
      tpu.vector_store %arg9[%c0_24, %c0_25], %23 {strides = array<i32>} : memref<32x128xf32, #tpu.memory_space<vmem>>, vector<32x128xf32>,
      %cst_26 = arith.constant 0.000000e+00 : f32
      %25 = vector.broadcast %cst_26 : f32 to vector<32x128xf32>
      %c0_27 = arith.constant 0 : index
      %c0_28 = arith.constant 0 : index
      %26 = vector.load %arg10[%c0_27, %c0_28] : memref<32x128xf32, #tpu.memory_space<vmem>>, vector<32x128xf32>
      tpu.vector_store %arg10[%c0_27, %c0_28], %25 {strides = array<i32>} : memref<32x128xf32, #tpu.memory_space<vmem>>, vector<32x128xf32>,
      %c0_29 = arith.constant 0 : index
      %c0_30 = arith.constant 0 : index
      %27 = vector.load %arg9[%c0_29, %c0_30] : memref<32x128xf32, #tpu.memory_space<vmem>>, vector<8x32xf32>
      tpu.vector_store %arg9[%c0_29, %c0_30], %17 {strides = array<i32>} : memref<32x128xf32, #tpu.memory_space<vmem>>, vector<8x32xf32>,
      %c0_31 = arith.constant 0 : index
      %c0_32 = arith.constant 0 : index
      %28 = vector.load %arg10[%c0_31, %c0_32] : memref<32x128xf32, #tpu.memory_space<vmem>>, vector<8x32xf32>
      tpu.vector_store %arg10[%c0_31, %c0_32], %22 {strides = array<i32>} : memref<32x128xf32, #tpu.memory_space<vmem>>, vector<8x32xf32>,
      %c8 = arith.constant 8 : index
      %c32 = arith.constant 32 : index
      %29 = vector.load %arg9[%c8, %c32] : memref<32x128xf32, #tpu.memory_space<vmem>>, vector<8x32xf32>
      tpu.vector_store %arg9[%c8, %c32], %17 {strides = array<i32>} : memref<32x128xf32, #tpu.memory_space<vmem>>, vector<8x32xf32>,
      %c8_33 = arith.constant 8 : index
      %c32_34 = arith.constant 32 : index
      %30 = vector.load %arg10[%c8_33, %c32_34] : memref<32x128xf32, #tpu.memory_space<vmem>>, vector<8x32xf32>
      tpu.vector_store %arg10[%c8_33, %c32_34], %22 {strides = array<i32>} : memref<32x128xf32, #tpu.memory_space<vmem>>, vector<8x32xf32>,
      %c16 = arith.constant 16 : index
      %c64 = arith.constant 64 : index
      %31 = vector.load %arg9[%c16, %c64] : memref<32x128xf32, #tpu.memory_space<vmem>>, vector<8x32xf32>
      tpu.vector_store %arg9[%c16, %c64], %17 {strides = array<i32>} : memref<32x128xf32, #tpu.memory_space<vmem>>, vector<8x32xf32>,
      %c16_35 = arith.constant 16 : index
      %c64_36 = arith.constant 64 : index
      %32 = vector.load %arg10[%c16_35, %c64_36] : memref<32x128xf32, #tpu.memory_space<vmem>>, vector<8x32xf32>
      tpu.vector_store %arg10[%c16_35, %c64_36], %22 {strides = array<i32>} : memref<32x128xf32, #tpu.memory_space<vmem>>, vector<8x32xf32>,
      %c24 = arith.constant 24 : index
      %c96 = arith.constant 96 : index
      %33 = vector.load %arg9[%c24, %c96] : memref<32x128xf32, #tpu.memory_space<vmem>>, vector<8x32xf32>
      tpu.vector_store %arg9[%c24, %c96], %17 {strides = array<i32>} : memref<32x128xf32, #tpu.memory_space<vmem>>, vector<8x32xf32>,
      %c24_37 = arith.constant 24 : index
      %c96_38 = arith.constant 96 : index
      %34 = vector.load %arg10[%c24_37, %c96_38] : memref<32x128xf32, #tpu.memory_space<vmem>>, vector<8x32xf32>
      tpu.vector_store %arg10[%c24_37, %c96_38], %22 {strides = array<i32>} : memref<32x128xf32, #tpu.memory_space<vmem>>, vector<8x32xf32>,
    } else {
    }
    %c0 = arith.constant 0 : index
    %c0_1 = arith.constant 0 : index
    %3 = vector.load %arg2[%c0, %c0_1] : memref<16x32xf32, #tpu.memory_space<vmem>>, vector<16x32xf32>
    %c0_2 = arith.constant 0 : index
    %c0_3 = arith.constant 0 : index
    %4 = vector.load %arg9[%c0_2, %c0_3] : memref<32x128xf32, #tpu.memory_space<vmem>>, vector<32x128xf32>
    %cst = arith.constant dense<0.000000e+00> : vector<16x128xf32>
    %5 = tpu.matmul %3, %4, %cst {dimension_numbers = #tpu.dot_dimension_numbers<[1], [0], [0], [1], [0, 0, 1, 1], [], []>} : vector<16x32xf32>, vector<32x128xf32>, vector<16x128xf32> -> vector<16x128xf32>
    %c0_4 = arith.constant 0 : index
    %c0_5 = arith.constant 0 : index
    %6 = vector.load %arg3[%c0_4, %c0_5] : memref<16x32xf32, #tpu.memory_space<vmem>>, vector<16x32xf32>
    %c0_6 = arith.constant 0 : index
    %c0_7 = arith.constant 0 : index
    %7 = vector.load %arg10[%c0_6, %c0_7] : memref<32x128xf32, #tpu.memory_space<vmem>>, vector<32x128xf32>
    %cst_8 = arith.constant dense<0.000000e+00> : vector<16x128xf32>
    %8 = tpu.matmul %6, %7, %cst_8 {dimension_numbers = #tpu.dot_dimension_numbers<[1], [0], [0], [1], [0, 0, 1, 1], [], []>} : vector<16x32xf32>, vector<32x128xf32>, vector<16x128xf32> -> vector<16x128xf32>
    %9 = arith.addf %5, %8 : vector<16x128xf32>
    %10 = math.tanh %9 : vector<16x128xf32>
    %c0_9 = arith.constant 0 : index
    %c0_10 = arith.constant 0 : index
    %c0_11 = arith.constant 0 : index
    %11 = vector.load %arg8[%c0_9, %c0_10, %c0_11] : memref<1x16x128xf32, #tpu.memory_space<vmem>>, vector<1x16x128xf32>
    %12 = vector.shape_cast %11 : vector<1x16x128xf32> to vector<16x128xf32>
    %13 = vector.shape_cast %10 : vector<16x128xf32> to vector<1x16x128xf32>
    tpu.vector_store %arg8[%c0_9, %c0_10, %c0_11], %13 {strides = array<i32>} : memref<1x16x128xf32, #tpu.memory_space<vmem>>, vector<1x16x128xf32>,
    return
  }
  func.func @transform_0(%arg0: i32, %arg1: i32) -> (i32, i32) {
    %c0_i32 = arith.constant 0 : i32
    %c0_i32_0 = arith.constant 0 : i32
    return %arg1, %c0_i32 : i32, i32
  }
  func.func @transform_1(%arg0: i32, %arg1: i32) -> (i32, i32) {
    %c0_i32 = arith.constant 0 : i32
    %c0_i32_0 = arith.constant 0 : i32
    return %arg1, %c0_i32 : i32, i32
  }
  func.func @transform_2(%arg0: i32, %arg1: i32) -> (i32, i32, i32) {
    %c0_i32 = arith.constant 0 : i32
    %c0_i32_0 = arith.constant 0 : i32
    %c0_i32_1 = arith.constant 0 : i32
    return %arg0, %c0_i32, %c0_i32_0 : i32, i32, i32
  }
  func.func @transform_3(%arg0: i32, %arg1: i32) -> (i32, i32) {
    %c0_i32 = arith.constant 0 : i32
    %c0_i32_0 = arith.constant 0 : i32
    %c0_i32_1 = arith.constant 0 : i32
    return %c0_i32, %c0_i32_0 : i32, i32
  }
  func.func @transform_4(%arg0: i32, %arg1: i32) -> (i32, i32) {
    %c0_i32 = arith.constant 0 : i32
    %c0_i32_0 = arith.constant 0 : i32
    %c0_i32_1 = arith.constant 0 : i32
    return %c0_i32, %c0_i32_0 : i32, i32
  }
  func.func @transform_5(%arg0: i32, %arg1: i32) -> (i32, i32) {
    %c0_i32 = arith.constant 0 : i32
    %c0_i32_0 = arith.constant 0 : i32
    %c0_i32_1 = arith.constant 0 : i32
    return %c0_i32, %c0_i32_0 : i32, i32
  }
  func.func @transform_6(%arg0: i32, %arg1: i32) -> (i32, i32, i32) {
    %c0_i32 = arith.constant 0 : i32
    %c0_i32_0 = arith.constant 0 : i32
    return %arg0, %arg1, %c0_i32 : i32, i32, i32
  }
}

</mosaic_0001>

<bundles_post_ra>
// kernel: tpu_custom_call.1
= control target key start
LH: loop header
LB: loop body
LE: loop exit
PB: predicated region body
PF: predicated region fallthrough
CT: control target
= control target key end

     0   :  { %s1630_s0 = inlined_call_operand.hbm [shape: f32[16,32], index: 0, kind: input, shape index: {}]   ;;  %s1631_s1 = inlined_call_operand.hbm [shape: f32[16,32], index: 1, kind: input, shape index: {}]   ;;  %s1632_s2 = inlined_call_operand.hbm [shape: f32[2,8,32], index: 2, kind: input, shape index: {}]   ;;  %s1633_s3 = inlined_call_operand.hbm [shape: f32[32,32], index: 3, kind: input, shape index: {}]   ;;  %s1634_s4 = inlined_call_operand.hbm [shape: f32[32,32], index: 4, kind: input, shape index: {}]   ;;  %s1635_s5 = inlined_call_operand.vmem [shape: f32[1,32], index: 5, kind: input, shape index: {}]   ;;  %s1636_s6 = inlined_call_operand.hbm [shape: f32[2,16,128], index: 6, kind: output, shape index: {}]  }
   0x1   :  { %1637 = sst [smem:[#allocation20_spill]] %s1630_s0 }
   0x2   :  { %1638 = sst [smem:[#allocation21_spill]] %s1631_s1 }
   0x3   :  { %1639 = sst [smem:[#allocation22_spill]] %s1633_s3 }
   0x4   :  { %11 = vsyncpa [#allocation5], 0 }
   0x5   :  { %12 = vsyncpa [#allocation8], 0 }
   0x6   :  { %13 = vsyncpa [#allocation12], 0 }
   0x7   :  { %14 = vsyncpa [#allocation6], 0 }
   0x8   :  { %16 = vsyncpa [#allocation6 + $0x1], 0  ;;  %s1372_s21 = smov 0   ;;  %s1374_s22 = smov 0  }
   0x9   :  { %s1376_s23 = smov 0   ;;  %s1378_s24 = smov 0  }
   0xa   :  { %s1380_s25 = smov 0   ;;  %s1382_s26 = smov 0  }
   0xb LB: > { %s1403_s27 = sadd.s32 4294967295, %s1320_s26   ;;  %p882_p0 = scmp.ge.s32.totalorder %s1320_s26, 1  ;;  %s1320_s26 = sphi %s1382_s26, %s22_s26   ;;  %s1316_s25 = sphi %s1380_s25, %s1655_s25   ;;  %s1312_s24 = sphi %s1378_s24, %s1654_s24   ;;  %s1308_s23 = sphi %s1376_s23, %s1653_s23   ;;  %s1304_s22 = sphi %s1374_s22, %s1652_s22   ;;  %s1300_s21 = sphi %s1372_s21, %s1651_s21  }
   0xc   : > { %p107_p1 = scmp.eq.s32.totalorder %s1403_s27, 0  ;;  %p195_p2 = scmp.eq.s32.totalorder %s1403_s27, 1 }
   0xd   : > { %p208_p3 = scmp.lt.s32.totalorder %s1320_s26, 3  ;;  %s1322_s29 = smov [#allocation4]  }
   0xe   : > { %s223_s30 = sshll.u32 %s1322_s29, 4  ;;  %s1323_s8 = smov [#allocation7]   ;;  %s224_s30 = int_to_ptr.vmem [resolvable:$true] %s223_s30 }
   0xf   : > { %p1409_p4 = pnand %p882_p0, %p208_p3  ;;  %s239_s9 = sshll.u32 %s1323_s8, 4  ;;  %s1422_s9 = int_to_ptr.vmem [resolvable:$true] %s239_s9 }
  0x10   : > { %s1324_s10 = smov [#allocation10]   ;;  %s1103_s12 = scalar_lea.vmem %s224_s30, 256 }
  0x11   : > { %p996_p5 = pneg %p1409_p4  ;;  %s252_s11 = sshll.u32 %s1324_s10, 4  ;;  %s1424_s11 = int_to_ptr.vmem [resolvable:$true] %s252_s11 }
  0x12   : > { %p1104_p9 = scmp.ne.s32.totalorder %s224_s30, %s1103_s12  ;;  %p1111_p12 = scmp.lt.s32.totalorder %s224_s30, %s224_s30 }
  0x13   : > { %p1418_p7 = pnand %p996_p5, %p107_p1  ;;  %p1112_p13 = scmp.lt.s32.totalorder %s1103_s12, %s1103_s12 }
  0x15   : > { %p1094_p8 = pneg %p1418_p7  ;;  %p1113_p0 = por %p1112_p13, %p1111_p12 }
  0x17   : > { %p1106_p10 = pnand %p1104_p9, %p1094_p8 }
  0x19   : > { %p1107_p11 = pneg %p1106_p10 }
  0x1b   : > { %p1114_p3 = pnand %p1113_p0, %p1107_p11 }
  0x1d   : > { %1117 = shalt.err (!%p1114_p3)
}
  0x1e   : > { %s1325_s13 = smov 128   ;;  %s1326_s14 = smov 8  }
  0x1f   : > { %s1642_s0 = sld [smem:[#allocation20_spill]]  ;;  %s1129_s17 = scalar_lea.vmem %s1422_s9, 256 }
  0x20   : > { %p1130_p5 = scmp.ne.s32.totalorder %s1422_s9, %s1129_s17  ;;  %p1137_p11 = scmp.lt.s32.totalorder %s1422_s9, %s1422_s9 }
  0x21   : > { %p1138_p12 = scmp.lt.s32.totalorder %s1129_s17, %s1129_s17 }
  0x22   : > { %p1132_p9 = pnand %p1130_p5, %p1094_p8 }
  0x23   : > { %p1139_p13 = por %p1138_p12, %p1137_p11 }
  0x24   : > { %p1133_p10 = pneg %p1132_p9 }
  0x25   : > { %999 = dma.hbm_to_vmem [thread:$0]  (!%p1418_p7), %s1642_s0, 256, %s224_s30, [#allocation5], %s1325_s13, %s1325_s13, %s1326_s14  }
  0x26   : > { %p1140_p0 = pnand %p1139_p13, %p1133_p10 }
  0x28   : > { %1143 = shalt.err (!%p1140_p0)
}
  0x29   : > { %s1643_s1 = sld [smem:[#allocation21_spill]]  ;;  %s1155_s20 = scalar_lea.vmem %s1424_s11, 512 }
  0x2a   : > { %p1156_p3 = scmp.ne.s32.totalorder %s1424_s11, %s1155_s20  ;;  %p1163_p10 = scmp.lt.s32.totalorder %s1424_s11, %s1424_s11 }
  0x2b   : > { %p1164_p11 = scmp.lt.s32.totalorder %s1155_s20, %s1155_s20 }
  0x2c   : > { %p1158_p5 = pnand %p1156_p3, %p1094_p8 }
  0x2d   : > { %p1165_p12 = por %p1164_p11, %p1163_p10 }
  0x2e   : > { %p1159_p9 = pneg %p1158_p5 }
  0x2f   : > { %1002 = dma.hbm_to_vmem [thread:$0]  (!%p1418_p7), %s1643_s1, 256, %s1422_s9, [#allocation8], %s1325_s13, %s1325_s13, %s1326_s14  }
  0x30   : > { %p1166_p13 = pnand %p1165_p12, %p1159_p9 }
  0x32   : > { %1169 = shalt.err (!%p1166_p13)
}
  0x33   : > { %s1644_s3 = sld [smem:[#allocation22_spill]]  ;;  %s1327_s8 = smov [#allocation11]  }
  0x34   : > { %s265_s9 = sshll.u32 %s1327_s8, 4  ;;  %s266_s9 = int_to_ptr.vmem [resolvable:$true] %s265_s9 }
  0x35   : > { %s1181_s10 = scalar_lea.vmem %s266_s9, 512  ;;  %p1189_p9 = scmp.lt.s32.totalorder %s266_s9, %s266_s9 }
  0x36   : > { %p1182_p0 = scmp.ne.s32.totalorder %s266_s9, %s1181_s10  ;;  %p1190_p10 = scmp.lt.s32.totalorder %s1181_s10, %s1181_s10 }
  0x38   : > { %p1184_p3 = pnand %p1182_p0, %p1094_p8  ;;  %p1191_p11 = por %p1190_p10, %p1189_p9 }
  0x39   : > { %1005 = dma.hbm_to_vmem [thread:$0]  (!%p1418_p7), %s1644_s3, 512, %s1424_s11, [#allocation8], %s1325_s13, %s1325_s13, %s1326_s14  }
  0x3a   : > { %p1185_p5 = pneg %p1184_p3 }
  0x3c   : > { %p1192_p12 = pnand %p1191_p11, %p1185_p5 }
  0x3e   : > { %1195 = shalt.err (!%p1192_p12)
}
  0x3f   : > { %1008 = dma.hbm_to_vmem [thread:$0]  (!%p1418_p7), %s1634_s4, 512, %s266_s9, [#allocation12], %s1325_s13, %s1325_s13, %s1326_s14  }
  0x40   : > { %s881_s7 = sadd.s32 4294967294, %s1320_s26   ;;  %s34_s15 = sadd.s32 1, %s1316_s25 }
  0x41   : > { %s93_s16 = sadd.s32 1, %s1308_s23  ;;  %p36_p8 = scmp.ge.s32.totalorder %s34_s15, 2 }
  0x42   : > { %p100_p13 = scmp.ne.s32.totalorder %s1308_s23, %s1304_s22  ;;  %p101_p0 = scmp.eq.s32.totalorder %s1320_s26, 0 }
  0x43   : > { %p106_p3 = scmp.ne.s32.totalorder %s1304_s22, %s1300_s21  ;;  %s1657_s15 = smov (%p36_p8, %s34_s15), 0 }
  0x44   : > { %p1492_p5 = por %p101_p0, %p100_p13  ;;  %s90_s14 = ssub.s32 %s1316_s25, %s1657_s15 }
  0x45   : > { %p1498_p7 = por %p107_p1, %p106_p3  ;;  %p1506_p9 = por %p195_p2, %p100_p13 }
  0x46   : > { %p91_p10 = scmp.eq.s32.totalorder %s90_s14, 0  ;;  %p201_p11 = scmp.eq.s32.totalorder %s881_s7, 1 }
  0x47   : > { %p1021_p12 = scmp.lt.s32.totalorder %s1320_s26, 2  ;;  %s282_s19 = sand.u32 1, %s1320_s26  }
  0x48   : > { %s1513_s20 = scalar_select %p91_p10, %s1308_s23, %s93_s16  }
  0x49   : > { %p1515_p8 = por %p201_p11, %p106_p3  ;;  %s284_s30 = sand.u32 1, %s1308_s23  }
  0x4a   : > { %s889_s8 = sshll.u32 %s1316_s25, 7  ;;  %s888_s9 = sshll.u32 %s284_s30, 3 }
  0x4b   : > { %s291_s12 = scalar_lea.hbm %s1632_s2, %s889_s8  ;;  %p1526_p2 = pnand %p1021_p12, %p1492_p5 }
  0x4c   : > { %s286_s7 = scalar_lea.vmem [#allocation9], %s888_s9  ;;  %s283_s14 = scalar_lea.sflag [#allocation5], %s282_s19 }
  0x4d   : > { %s293_s16 = sshll.u32 %s286_s7, 4  ;;  %p1198_p13 = pneg %p1526_p2  ;;  %s294_s16 = int_to_ptr.vmem [resolvable:$true] %s293_s16 }
  0x4e   : > { %s1209_s1 = scalar_lea.vmem %s294_s16, 128  ;;  %s1328_s30 = smov [#allocation9]  }
  0x4f   : > { %p1210_p0 = scmp.ne.s32.totalorder %s294_s16, %s1209_s1  ;;  %s1214_s3 = sshll.u32 %s1328_s30, 4  ;;  %s1215_s3 = int_to_ptr.vmem [resolvable:$false] %s1214_s3 }
  0x50   : > { %s1216_s8 = scalar_lea.vmem %s1215_s3, 256  ;;  %p1217_p11 = scmp.lt.s32.totalorder %s294_s16, %s1215_s3 }
  0x51   : > { %p1212_p3 = pnand %p1210_p0, %p1198_p13  ;;  %p1218_p5 = scmp.lt.s32.totalorder %s1216_s8, %s1209_s1 }
  0x53   : > { %p1213_p10 = pneg %p1212_p3  ;;  %p1219_p12 = por %p1218_p5, %p1217_p11 }
  0x55   : > { %p1220_p6 = pnand %p1219_p12, %p1213_p10 }
  0x57   : > { %1223 = shalt.err (!%p1220_p6)
}
  0x58   : > { %1012 = dma.hbm_to_vmem [thread:$0]  (!%p1526_p2), %s291_s12, 128, %s294_s16, %s283_s14  }
  0x59   : > { %302 = sbr.rel (%p1409_p4) target bundleno = 669 (0x29d), region = 44 }
  0x5e   : > { %1275 = dma.done.wait (%p107_p1), [#allocation5], 256  }
  0x5f   : > { %1277 = vsyncadd (%p107_p1), [#allocation5], 4294967040 }
  0x60   : > { %1279 = dma.done.wait (%p107_p1), [#allocation8], 256  }
  0x61   : > { %1281 = vsyncadd (%p107_p1), [#allocation8], 4294967040  ;;  %s312_s0 = sand.u32 1, %s1403_s27   ;;  %s1546_s1 = sand.u32 1, %s1304_s22  }
  0x62   : > { %s893_s3 = sshll.u32 %s1546_s1, 3  ;;  %s313_s28 = scalar_lea.sflag [#allocation5], %s312_s0 }
  0x63   : > { %s1549_s17 = scalar_lea.vmem [#allocation9], %s893_s3 }
  0x64   : > { %1283 = dma.done.wait (%p1498_p7), %s313_s28, 128  }
  0x65   : > { %1285 = vsyncadd (%p1498_p7), %s313_s28, 4294967168 }
  0x66   : > { %1287 = dma.done.wait (%p107_p1), [#allocation8], 512  }
  0x67   : > { %1289 = vsyncadd (%p107_p1), [#allocation8], 4294966784 }
  0x68   : > { %1291 = dma.done.wait (%p107_p1), [#allocation12], 512  }
  0x69   : > { %1293 = vsyncadd (%p107_p1), [#allocation12], 4294966784  ;;  %v1329_v0 = vmov 0.0   ;;  %vm1330_vm0 = vmmov 0   ;;  %v364_v1 = vld [vmem:[#allocation10 + $0x18] sm:$0xff]  ;;  %v363_v3 = vld [vmem:[#allocation10 + $0x10] sm:$0xff] }
  0x6a   : > { %932 = vmatprep.subr.mxu0 %v1329_v0  ;;  %520 = vst [vmem:[#allocation2] sm:$0xff] %v1329_v0  ;;  %521 = vst [vmem:[#allocation2 + $0x8] sm:$0xff] %v1329_v0  ;;  %943 = vmatprep.subr.mxu1 %v1329_v0  ;;  %v442_v2 = vld [vmem:[#allocation11 + $0x18] sm:$0xff]  ;;  %v441_v4 = vld [vmem:[#allocation11 + $0x10] sm:$0xff]  ;;  %vm365_vm1 = vcmask 261120   ;;  %s1331_s19 = smov 64  }
  0x6b   : > { %522 = vst [vmem:[#allocation2 + $0x10] sm:$0xff] %v1329_v0  ;;  %523 = vst [vmem:[#allocation2 + $0x18] sm:$0xff] %v1329_v0  ;;  %940 = vmatprep.mubr.msk.f32.mxu0 %vm1330_vm0, %v1329_v0  ;;  %951 = vmatprep.mubr.msk.f32.mxu1 %vm1330_vm0, %v1329_v0  ;;  %v362_v5 = vld [vmem:[#allocation10 + $0x8] sm:$0xff]  ;;  %v361_v7 = vld [vmem:[#allocation10] sm:$0xff]  ;;  %s1332_s9 = smov 96   ;;  %s1333_s10 = smov 32  }
  0x6c   : > { %524 = vst [vmem:[#allocation3] sm:$0xff] %v1329_v0  ;;  %525 = vst [vmem:[#allocation3 + $0x8] sm:$0xff] %v1329_v0  ;;  %933 = vmatpush3.msra.mxu0 %v364_v1  ;;  %944 = vmatpush3.msra.mxu1 %v442_v2  ;;  %v440_v6 = vld [vmem:[#allocation11 + $0x8] sm:$0xff]  ;;  %v439_v8 = vld [vmem:[#allocation11] sm:$0xff]  ;;  %vm544_vm2 = vcmask 785920   ;;  %vm553_vm3 = vcmask 1048320  }
  0x6d   : > { %526 = vst [vmem:[#allocation3 + $0x10] sm:$0xff] %v1329_v0  ;;  %527 = vst [vmem:[#allocation3 + $0x18] sm:$0xff] %v1329_v0  ;;  %934 = vmatprep.subr.mxu0 %v1329_v0  ;;  %945 = vmatprep.subr.mxu1 %v1329_v0  ;;  %v360_v9 = vld [vmem:[%s1549_s17] sm:$0xff]  ;;  %v565_v16 = vld [vmem:[#allocation7] sm:$0xff]  ;;  %vm534_vm4 = vcmask 523520   ;;  %s896_s11 = sshll.u32 %s1546_s1, 4 }
  0x6e   : > { %935 = vmatpush3.msra.mxu0 %v363_v3  ;;  %946 = vmatpush3.msra.mxu1 %v441_v4  ;;  %v898_v10 = vld [vmem:[%s1635_s5] ss:$0 sm:$0xff]  ;;  %v566_v30 = vld [vmem:[#allocation7 + $0x8] sm:$0xff]  ;;  %v560_v33 = vld [vmem:[#allocation4 + $0x8] sm:$0xff]  ;;  %s909_s12 = sshll.u32 %s1312_s24, 8  ;;  %s352_s7 = scalar_lea.vmem [#allocation13], %s896_s11 }
  0x6f   : > { %936 = vmatprep.subr.mxu0 %v1329_v0  ;;  %947 = vmatprep.subr.mxu1 %v1329_v0  ;;  %v559_v17 = vld [vmem:[#allocation4] sm:$0xff]  ;;  %s754_s16 = sshll.u32 %s352_s7, 4  ;;  %s1580_s8 = scalar_lea.hbm %s1636_s6, %s909_s12  ;;  %s1582_s16 = int_to_ptr.vmem [resolvable:$true] %s754_s16 }
  0x70   : > { %937 = vmatpush3.msra.mxu0 %v362_v5  ;;  %948 = vmatpush3.msra.mxu1 %v440_v6  ;;  %s739_s0 = scalar_lea.sflag [#allocation6], %s1546_s1  ;;  %s1224_s3 = scalar_lea.vmem %s1582_s16, 256 }
  0x71   : > { %938 = vmatprep.subr.mxu0 %v1329_v0  ;;  %949 = vmatprep.subr.mxu1 %v1329_v0  ;;  %p1225_p1 = scmp.ne.s32.totalorder %s1582_s16, %s1224_s3  ;;  %s1334_s24 = smov [#allocation13]  }
  0x72   : > { %939 = vmatpush3.msra.mxu0 %v361_v7  ;;  %950 = vmatpush3.msra.mxu1 %v439_v8  ;;  %s1228_s28 = sshll.u32 %s1334_s24, 4  ;;  %s1229_s28 = int_to_ptr.vmem [resolvable:$false] %s1228_s28 }
  0x73   : > { %941 = vmatmul.mubr.msk.f32.vlgmr.msra.gmra.mxu0 %vm365_vm1, %v360_v9  ;;  %952 = vmatmul.mubr.msk.f32.vlgmr.msra.gmra.mxu1 %vm365_vm1, %v360_v9  ;;  %p1226_p4 = pnand %p1225_p1, %p1506_p9  ;;  %s1230_s17 = scalar_lea.vmem %s1229_s28, 512 }
  0x74   : > { %962 = vmatprep.mubr.msk.f32.mxu0 %vm365_vm1, %v565_v16  ;;  %973 = vmatprep.mubr.msk.f32.mxu1 %vm365_vm1, %v559_v17  ;;  %p1231_p7 = scmp.lt.s32.totalorder %s1582_s16, %s1229_s28  ;;  %p1232_p2 = scmp.lt.s32.totalorder %s1230_s17, %s1224_s3 }
  0x75   : > { %p1227_p6 = pneg %p1226_p4 }
  0x76   : > { %p1233_p13 = por %p1232_p2, %p1231_p7 }
  0x78   : > { %p1234_p0 = pnand %p1233_p13, %p1227_p6 }
 0x133   : > { %v435_v11 = vpop.f32.mrf.mxu0  ;;  %v516_v12 = vpop.f32.mrf.mxu1 }
 0x134   : > { %528 = vst.msk [vmem:[#allocation2] sm:$0xff] %vm365_vm1, %v435_v11  ;;  %v517_v13 = vadd.f32 %v898_v10, %v516_v12  ;;  %541 = vrot.lane.b32.xlu1 %v435_v11, %s1331_s19  ;;  %550 = vrot.lane.b32.xlu0 %v435_v11, %s1332_s9 }
 0x135   : > { %v942_v14 = vpop.f32.mrf.mxu0  ;;  %v953_v15 = vpop.f32.mrf.mxu1 }
 0x136   : > { %529 = vst.msk [vmem:[#allocation3] sm:$0xff] %vm365_vm1, %v517_v13 }
 0x138   : > { %546 = vrot.lane.b32.xlu1 %v517_v13, %s1331_s19  ;;  %555 = vrot.lane.b32.xlu0 %v517_v13, %s1332_s9 }
 0x13b   : > { %v561_v32 = vld [vmem:[#allocation2] sm:$0xff] }
 0x13c   : > { %537 = vrot.lane.b32.xlu1 %v517_v13, %s1333_s10  ;;  %531 = vrot.lane.b32.xlu0 %v435_v11, %s1333_s10 }
 0x13d   : > { %v567_v31 = vld [vmem:[#allocation3] sm:$0xff] }
 0x1a6   : > { %v542_v18 = vpop.permute.xlu1 %541  ;;  %v551_v19 = vpop.permute.xlu0 %550 }
 0x1a7   : > { %545 = vst.msk [vmem:[#allocation2 + $0x10] sm:$0xff] %vm544_vm2, %v542_v18 }
 0x1a8   : > { %554 = vst.msk [vmem:[#allocation2 + $0x18] sm:$0xff] %vm553_vm3, %v551_v19 }
 0x1aa   : > { %v547_v20 = vpop.permute.xlu1 %546  ;;  %v556_v21 = vpop.permute.xlu0 %555 }
 0x1ab   : > { %549 = vst.msk [vmem:[#allocation3 + $0x10] sm:$0xff] %vm544_vm2, %v547_v20 }
 0x1ac   : > { %558 = vst.msk [vmem:[#allocation3 + $0x18] sm:$0xff] %vm553_vm3, %v556_v21 }
 0x1ae   : > { %v538_v22 = vpop.permute.xlu1 %537  ;;  %v532_v23 = vpop.permute.xlu0 %531  ;;  %v563_v25 = vld [vmem:[#allocation2 + $0x10] sm:$0xff] }
 0x1af   : > { %v564_v24 = vld [vmem:[#allocation2 + $0x18] sm:$0xff]  ;;  %540 = vst.msk [vmem:[#allocation3 + $0x8] sm:$0xff] %vm534_vm4, %v538_v22  ;;  %535 = vst.msk [vmem:[#allocation2 + $0x8] sm:$0xff] %vm534_vm4, %v532_v23 }
 0x1b0   : > { %965 = vmatprep.subr.mxu1 %v564_v24 }
 0x1b1   : > { %966 = vmatpush3.msra.mxu1 %v564_v24 }
 0x1b2   : > { %967 = vmatprep.subr.mxu1 %v563_v25  ;;  %v569_v27 = vld [vmem:[#allocation3 + $0x10] sm:$0xff] }
 0x1b3   : > { %968 = vmatpush3.msra.mxu1 %v563_v25  ;;  %v570_v26 = vld [vmem:[#allocation3 + $0x18] sm:$0xff] }
 0x1b4   : > { %954 = vmatprep.subr.mxu0 %v570_v26 }
 0x1b5   : > { %955 = vmatpush3.msra.mxu0 %v570_v26 }
 0x1b6   : > { %956 = vmatprep.subr.mxu0 %v569_v27  ;;  %v568_v28 = vld [vmem:[#allocation3 + $0x8] sm:$0xff] }
 0x1b7   : > { %957 = vmatpush3.msra.mxu0 %v569_v27  ;;  %v562_v29 = vld [vmem:[#allocation2 + $0x8] sm:$0xff] }
 0x1b8   : > { %958 = vmatprep.subr.mxu0 %v568_v28  ;;  %969 = vmatprep.subr.mxu1 %v562_v29 }
 0x1b9   : > { %959 = vmatpush3.msra.mxu0 %v568_v28  ;;  %970 = vmatpush3.msra.mxu1 %v562_v29 }
 0x1ba   : > { %960 = vmatprep.subr.mxu0 %v567_v31  ;;  %971 = vmatprep.subr.mxu1 %v561_v32 }
 0x1bb   : > { %961 = vmatpush3.msra.mxu0 %v567_v31  ;;  %972 = vmatpush3.msra.mxu1 %v561_v32 }
 0x1bc   : > { %963 = vmatmul.mubr.msk.f32.vlgmr.msra.gmra.mxu0 %vm365_vm1, %v566_v30  ;;  %974 = vmatmul.mubr.msk.f32.vlgmr.msra.gmra.mxu1 %vm365_vm1, %v560_v33 }
 0x27c   : > { %v964_v34 = vpop.f32.mrf.mxu0  ;;  %v975_v35 = vpop.f32.mrf.mxu1 }
 0x27d   : > { %v731_v36 = vadd.f32 %v975_v35, %v964_v34 }
 0x27e   : > { %v644_v37 = vpop.f32.mrf.mxu0  ;;  %v725_v38 = vpop.f32.mrf.mxu1 }
 0x27f   : > { %1088 = vtanh.f32 %v731_v36  ;;  %v726_v39 = vadd.f32 %v725_v38, %v644_v37 }
 0x281   : > { %1090 = vtanh.f32 %v726_v39 }
 0x28c   : > { %v1089_v40 = vpop.eup %1088 }
 0x28d   : > { %737 = vst [vmem:[%s352_s7 + $0x8] sm:$0xff] %v1089_v40 }
 0x28e   : > { %v1091_v41 = vpop.eup %1090 }
 0x28f   : > { %736 = vst [vmem:[%s352_s7] sm:$0xff] %v1091_v41 }
 0x290   : > { %1237 = shalt.err (!%p1234_p0)
}
 0x291   : > { %s1238_s27 = scalar_lea.hbm %s1580_s8, 256  ;;  %s1242_s9 = scalar_lea.hbm %s1636_s6, 512 }
 0x292   : > { %p1239_p3 = scmp.ne.s32.totalorder %s1580_s8, %s1238_s27  ;;  %p1243_p5 = scmp.lt.s32.totalorder %s1580_s8, %s1636_s6 }
 0x293   : > { %p1244_p12 = scmp.lt.s32.totalorder %s1242_s9, %s1238_s27 }
 0x294   : > { %p1240_p10 = pnand %p1239_p3, %p1506_p9 }
 0x295   : > { %p1245_p1 = por %p1244_p12, %p1243_p5 }
 0x296   : > { %p1241_p11 = pneg %p1240_p10 }
 0x298   : > { %p1246_p4 = pnand %p1245_p1, %p1241_p11 }
 0x29a   : > { %1249 = shalt.err (!%p1246_p4)
}
 0x29b   : > { %s1335_s12 = smov 128   ;;  %s1336_s7 = smov 8  }
 0x29c   : > { %994 = dma.vmem_to_hbm [thread:$0]  (%p1506_p9), %s1582_s16, 256, %s1580_s8, %s739_s0, %s1335_s12, %s1335_s12, %s1336_s7  }
 0x29d PF: > { %s769_s14 = sand.u32 1, %s1300_s21   ;;  %p1650_p6 = scmp.ge.s32.totalorder %s1320_s26, 2 }
 0x29e   : > { %s770_s30 = scalar_lea.sflag [#allocation6], %s769_s14 }
 0x29f   : > { %p1014_p7 = pnand %p1650_p6, %p1515_p8 }
 0x2a1   : > { %p1015_p2 = pneg %p1014_p7 }
 0x2a3   : > { %1295 = dma.done.wait (%p1015_p2), %s770_s30, 256  }
 0x2a4   : > { %1297 = vsyncadd (%p1015_p2), %s770_s30, 4294967040  ;;  %s22_s26 = sadd.s32 1, %s1320_s26   ;;  %s1651_s21 = smov %s1304_s22 }
 0x2a5   : > { %p19_p13 = scmp.ge.s32.totalorder %s22_s26, 4   ;;  %s1652_s22 = smov %s1308_s23 }
 0x2a6   : > { %s1653_s23 = smov %s1513_s20  ;;  %s1654_s24 = smov %s1316_s25 }
 0x2a7   : > { %s1655_s25 = smov %s1657_s15  ;;  %21 = sbr.rel (!%p19_p13) target bundleno = 11 (0xb), region = 110 }
 0x2ac   :  { %775 = vsyncpa [#allocation5], 1 }
 0x2ad   :  { %777 = vsyncpa [#allocation5 + $0x1], 1 }
 0x2ae   :  { %778 = vsyncpa [#allocation8], 1 }
 0x2af   :  { %779 = vsyncpa [#allocation12], 1 }
 0x2b0   :  { %780 = vsyncpa [#allocation6], 1 }
 0x2b1   :  { %782 = vsyncpa [#allocation6 + $0x1], 1 }

</bundles_post_ra>
